<compile_context>
chip_gen: v5e
topology: v5e:2x2
jax: 0.10.0
libtpu: 0.0.40
codegen_flags: <defaults>
</compile_context>

<pallas_src>
import math

import jax
import jax.numpy as jnp
from jax.experimental import pallas as pl
from jax.experimental.pallas import tpu as pltpu

# Wide lane-dense candidates (multiples of 128), widest first.
_LANE_CANDIDATES = (8192, 4096, 2048, 1024, 512, 256, 128)
# ~2 MiB per block: (1 input + 1 output) x double-buffering ~= 8 MiB VMEM.
_TARGET_BLOCK_BYTES = 2 * 1024 * 1024


def _copy_kernel(x_ref, o_ref):
    # Identity copy of the current (block_rows, cols) tile.
    o_ref[...] = x_ref[...]


def _pick_layout(total: int, itemsize: int):
    """Choose a lane-dense (rows, cols) view of the flat buffer + block row count."""
    cols = None
    for c in _LANE_CANDIDATES:
        if total % c == 0:
            cols = c
            break
    if cols is None:
        return None
    rows = total // cols

    # Sub-32-bit dtypes pack along sublanes: native packed tile is 8*(4/itemsize) rows.
    rows_unit = 8 * max(1, 4 // max(1, itemsize))
    rows_for_target = max(
        rows_unit,
        (_TARGET_BLOCK_BYTES // (cols * itemsize)) // rows_unit * rows_unit,
    )

    if rows <= rows_for_target:
        if rows >= 2 * rows_unit:
            # Split into >= 2 blocks so both TensorCores get work on v7x.
            block_rows = max(rows_unit, ((rows + 1) // 2 // rows_unit) * rows_unit)
        else:
            block_rows = rows  # full-extent block (exempt from the 8-row rule)
    else:
        block_rows = rows_for_target
    return rows, cols, block_rows


def _pallas_copy_2d(x2d: jax.Array, block_rows: int) -> jax.Array:
    """Materialize a copy of a lane-dense (rows, cols) array via a tiled Pallas kernel."""
    rows, cols = x2d.shape
    grid = (pl.cdiv(rows, block_rows),)
    return pl.pallas_call(
        _copy_kernel,
        out_shape=jax.ShapeDtypeStruct((rows, cols), x2d.dtype),
        grid_spec=pltpu.PrefetchScalarGridSpec(
            num_scalar_prefetch=0,
            grid=grid,
            in_specs=[pl.BlockSpec((block_rows, cols), lambda i: (i, 0))],
            out_specs=pl.BlockSpec((block_rows, cols), lambda i: (i, 0)),
        ),
        compiler_params=pltpu.CompilerParams(
            dimension_semantics=("parallel",),
            vmem_limit_bytes=32 * 1024 * 1024,
        ),
    )(x2d)


def reshape_forward(x: jax.Array, out_shape) -> jax.Array:
    """Equivalent of Reshape(out_shape)(x) == x.reshape(-1, *out_shape)."""
    out_shape = tuple(int(d) for d in out_shape)
    total = math.prod(x.shape)
    inner = math.prod(out_shape)
    if total == 0 or inner == 0:
        # Degenerate sizes: reshape is metadata-only, nothing to copy.
        return jnp.reshape(x, (-1,) + out_shape)
    assert total % inner == 0, "incompatible reshape"
    lead = total // inner
    target = (lead,) + out_shape

    layout = _pick_layout(total, jnp.dtype(x.dtype).itemsize)
    if layout is None:
        # No multiple-of-128 factor of the flat size: reshape is metadata-only anyway,
        # so skip the copy kernel rather than padding (padding would add HBM passes).
        return jnp.reshape(x, target)

    rows, cols, block_rows = layout
    x2d = jnp.reshape(x, (rows, cols))      # metadata only (row-major order preserved)
    y2d = _pallas_copy_2d(x2d, block_rows)  # single lane-dense HBM pass
    return jnp.reshape(y2d, target)         # metadata only


if __name__ == "__main__":
    # Example consistent with the module: x of shape (2, 4, 16, 16),
    # out_shape = (4, 16, 16)  ->  output (2, 4, 16, 16)
    x = jax.random.normal(jax.random.PRNGKey(0), (2, 4, 16, 16), dtype=jnp.float32)
    out_shape = (4, 16, 16)

    y = reshape_forward(x, out_shape)
    jax.block_until_ready(y)

    ref = jnp.reshape(x, (-1,) + out_shape)
    assert y.shape == ref.shape, (y.shape, ref.shape)
    assert y.dtype == ref.dtype
    assert bool(jnp.array_equal(y, ref))

    # Extra coverage: multi-block grid with a partial final block (rows=20, block_rows=8).
    x2 = jax.random.normal(jax.random.PRNGKey(1), (20, 64, 128), dtype=jnp.float32)
    y2 = reshape_forward(x2, (64, 128))
    jax.block_until_ready(y2)
    ref2 = jnp.reshape(x2, (-1, 64, 128))
    assert y2.shape == ref2.shape
    assert bool(jnp.array_equal(y2, ref2))

    # Extra coverage: bf16 (packed sublane tile of 16 rows) with a flattening reshape.
    x3 = jax.random.normal(jax.random.PRNGKey(2), (4, 4, 32, 32), dtype=jnp.bfloat16)
    y3 = reshape_forward(x3, (4 * 32 * 32,))
    jax.block_until_ready(y3)
    ref3 = jnp.reshape(x3, (-1, 4 * 32 * 32))
    assert y3.shape == ref3.shape
    assert y3.dtype == ref3.dtype
    assert bool(jnp.array_equal(y3, ref3))

    print("KERNEL_OK")
</pallas_src>

<mosaic_0001>
module attributes {stable_mosaic.version = 11 : i64} {
  func.func @_copy_kernel(%arg0: i32, %arg1: memref<1x2048xf32, #tpu.memory_space<vmem>>, %arg2: memref<1x2048xf32, #tpu.memory_space<vmem>>) attributes {dimension_semantics = [#tpu.dimension_semantics<parallel>], iteration_bounds = array<i64: 1>, scalar_prefetch = 0 : i64, scratch_operands = 0 : i64, tpu.core_type = #tpu.core_type<tc>, window_params = [{transform_indices = @transform_0, window_bounds = array<i64: 1, 2048>}, {transform_indices = @transform_1, window_bounds = array<i64: 1, 2048>}]} {
    %c0 = arith.constant 0 : index
    %c0_0 = arith.constant 0 : index
    %0 = vector.load %arg1[%c0, %c0_0] : memref<1x2048xf32, #tpu.memory_space<vmem>>, vector<1x2048xf32>
    %c0_1 = arith.constant 0 : index
    %c0_2 = arith.constant 0 : index
    %1 = vector.load %arg2[%c0_1, %c0_2] : memref<1x2048xf32, #tpu.memory_space<vmem>>, vector<1x2048xf32>
    tpu.vector_store %arg2[%c0_1, %c0_2], %0 {strides = array<i32>} : memref<1x2048xf32, #tpu.memory_space<vmem>>, vector<1x2048xf32>,
    return
  }
  func.func @transform_0(%arg0: i32) -> (i32, i32) {
    %c0_i32 = arith.constant 0 : i32
    %c0_i32_0 = arith.constant 0 : i32
    return %arg0, %c0_i32 : i32, i32
  }
  func.func @transform_1(%arg0: i32) -> (i32, i32) {
    %c0_i32 = arith.constant 0 : i32
    %c0_i32_0 = arith.constant 0 : i32
    return %arg0, %c0_i32 : i32, i32
  }
}

</mosaic_0001>

<bundles_post_ra>
// kernel: tpu_custom_call.1
= control target key start
LH: loop header
LB: loop body
LE: loop exit
PB: predicated region body
PF: predicated region fallthrough
CT: control target
= control target key end

     0   :  { %6 = vsyncpa [#allocation3], 0  ;;  %s116_s0 = inlined_call_operand.hbm [shape: f32[1,2048], index: 0, kind: input, shape index: {}]   ;;  %s117_s1 = inlined_call_operand.hbm [shape: f32[1,2048], index: 1, kind: output, shape index: {}]  }
   0x1   :  { %7 = vsyncpa [#allocation4], 0  ;;  %s13_s8 = sshll.u32 %s116_s0, 4  ;;  %s98_s9 = smov [#allocation2]   ;;  %s14_s8 = int_to_ptr.hbm [resolvable:$true] %s13_s8 }
   0x2   :  { %s15_s10 = sshll.u32 %s98_s9, 4  ;;  %s16_s10 = int_to_ptr.vmem [resolvable:$true] %s15_s10 }
   0x3   :  { %18 = dma.hbm_to_vmem [thread:$0]  %s14_s8, 256, %s16_s10, [#allocation3]  }
   0x4   :  { %94 = dma.done.wait [#allocation3], 256  }
   0x5   :  { %95 = vsyncadd [#allocation3], 4294967040  ;;  %s99_s11 = smov [#allocation5]   ;;  %s34_s15 = sshll.u32 %s117_s1, 4  ;;  %v23_v0 = vld [vmem:[#allocation2] sm:$0xff]  ;;  %v24_v1 = vld [vmem:[#allocation2 + $0x8] sm:$0xff]  ;;  %s35_s15 = int_to_ptr.hbm [resolvable:$true] %s34_s15 }
   0x6   :  { %s32_s12 = sshll.u32 %s99_s11, 4  ;;  %25 = vst [vmem:[#allocation5] sm:$0xff] %v23_v0  ;;  %s33_s12 = int_to_ptr.vmem [resolvable:$true] %s32_s12 }
   0x7   :  { %26 = vst [vmem:[#allocation5 + $0x8] sm:$0xff] %v24_v1 }
   0x8   :  { %37 = dma.vmem_to_hbm [thread:$0]  %s33_s12, 256, %s35_s15, [#allocation4]  }
   0x9   :  { %96 = dma.done.wait [#allocation4], 256  }
   0xa   :  { %97 = vsyncadd [#allocation4], 4294967040 }
   0xb   :  { %42 = vsyncpa [#allocation3], 1 }
   0xc   :  { %43 = vsyncpa [#allocation4], 1 }

</bundles_post_ra>
